<compile_context>
chip_gen: v7x
topology: tpu7x:2x2x1
jax: 0.10.0
libtpu: 0.0.40
codegen_flags: <defaults>
</compile_context>

<pallas_src>
import functools
import math

import jax
import jax.numpy as jnp
from jax.experimental import pallas as pl
from jax.experimental.pallas import tpu as pltpu

_CHUNK = 128                               # rows per "high-part" chunk (multiple of 8)
_TARGET_BLOCK_BYTES = 2 * 1024 * 1024      # ~2 MiB output block (safe on v5e defaults)


def _pe_kernel(a_ref, b_ref, cos_lo_ref, sin_lo_ref, o_ref):
    """One grid step writes a (tile_rows, Dp) slab of the PE table.

    a_ref, b_ref       : (n_chunks_total, Dp) pinned high-part rows
    cos_lo_ref, sin_lo_ref : (_CHUNK, Dp) pinned low-part tables
    o_ref              : (tile_rows, Dp) output block, tile_rows = tile_chunks * _CHUNK
    """
    tile_chunks = o_ref.shape[0] // _CHUNK
    i = pl.program_id(0)

    def body(c, carry):
        g = i * tile_chunks + c                         # global chunk index
        a = a_ref[pl.ds(g, 1), :]                       # (1, Dp)
        b = b_ref[pl.ds(g, 1), :]                       # (1, Dp)
        off = pl.multiple_of(c * _CHUNK, _CHUNK)
        # 2 mul + 1 add per element; broadcast of the (1, Dp) rows over sublanes.
        o_ref[pl.ds(off, _CHUNK), :] = (
            a * cos_lo_ref[...] + b * sin_lo_ref[...])
        return carry

    jax.lax.fori_loop(0, tile_chunks, body, 0)


def _choose_tiling(n_chunks, d_pad):
    """Pick (tile_chunks, n_steps): ~2 MiB blocks, >=2 and even steps when possible."""
    chunk_bytes = _CHUNK * d_pad * 4
    tile_chunks = max(1, _TARGET_BLOCK_BYTES // chunk_bytes)
    if n_chunks >= 2:
        # At least two grid steps so both v7x TensorCores get work.
        tile_chunks = min(tile_chunks, (n_chunks + 1) // 2)
    tile_chunks = min(tile_chunks, n_chunks)
    n_steps = -(-n_chunks // tile_chunks)
    if n_steps > 1 and n_steps % 2 == 1:
        # Even step count -> balanced split across v7x's two TensorCores.
        n_steps += 1
        tile_chunks = -(-n_chunks // n_steps)
    return tile_chunks, n_steps


@functools.lru_cache(maxsize=None)
def _pe_table(seq_len, d_model):
    """Builds the (1, seq_len, d_model) float32 PE table (cached per shape)."""
    d_pad = -(-d_model // 128) * 128                      # lane-dense output
    n_chunks_needed = -(-seq_len // _CHUNK)
    tile_chunks, n_steps = _choose_tiling(n_chunks_needed, d_pad)
    n_chunks = tile_chunks * n_steps                      # padded chunk count
    seq_pad = n_chunks * _CHUNK
    tile_rows = tile_chunks * _CHUNK

    # ---- constant tables (computed once per (seq_len, d_model), cached) ----
    col = jnp.arange(d_pad)
    pair = (2 * (col // 2)).astype(jnp.float32)
    freq = jnp.exp(pair * (-(math.log(10000.0) / d_model)))        # (Dp,)
    even = (col % 2 == 0)[None, :]

    r = jnp.arange(_CHUNK, dtype=jnp.float32)[:, None]             # (128, 1)
    ang_lo = r * freq[None, :]                                     # (128, Dp)
    cos_lo = jnp.cos(ang_lo)
    sin_lo = jnp.sin(ang_lo)

    base = (jnp.arange(n_chunks, dtype=jnp.float32) * _CHUNK)[:, None]
    ang_hi = base * freq[None, :]                                  # (nc, Dp)
    sin_hi = jnp.sin(ang_hi)
    cos_hi = jnp.cos(ang_hi)
    a = jnp.where(even, sin_hi, cos_hi)                            # (nc, Dp)
    b = jnp.where(even, cos_hi, -sin_hi)                           # (nc, Dp)

    pe = pl.pallas_call(
        _pe_kernel,
        out_shape=jax.ShapeDtypeStruct((seq_pad, d_pad), jnp.float32),
        grid=(n_steps,),
        in_specs=[
            pl.BlockSpec((n_chunks, d_pad), lambda i: (0, 0)),     # A (pinned)
            pl.BlockSpec((n_chunks, d_pad), lambda i: (0, 0)),     # B (pinned)
            pl.BlockSpec((_CHUNK, d_pad), lambda i: (0, 0)),       # cos_lo (pinned)
            pl.BlockSpec((_CHUNK, d_pad), lambda i: (0, 0)),       # sin_lo (pinned)
        ],
        out_specs=pl.BlockSpec((tile_rows, d_pad), lambda i: (i, 0)),
        compiler_params=pltpu.CompilerParams(
            dimension_semantics=("parallel",)),
    )(a, b, cos_lo, sin_lo)

    return pe[:seq_len, :d_model][None]


def positional_embedding(x, d_model=None):
    """Mirrors PositionalEmbedding.forward: returns (1, seq_len, d_model) float32."""
    if d_model is None:
        d_model = x.shape[-1]
    return _pe_table(int(x.shape[1]), int(d_model))


def _reference(seq_len, d_model):
    pos = jnp.arange(seq_len, dtype=jnp.float32)[:, None]
    div = jnp.exp(jnp.arange(0, d_model, 2, dtype=jnp.float32)
                  * (-(math.log(10000.0) / d_model)))
    pe = jnp.zeros((seq_len, d_model), jnp.float32)
    pe = pe.at[:, 0::2].set(jnp.sin(pos * div))
    pe = pe.at[:, 1::2].set(jnp.cos(pos * div))
    return pe[None]


if __name__ == "__main__":
    key = jax.random.PRNGKey(0)
    batch, seq, d_model = 2, 8, 32
    x = jax.random.normal(key, (batch, seq, d_model), dtype=jnp.float32)

    out = jax.block_until_ready(positional_embedding(x, d_model))
    ref = _reference(seq, d_model)
    assert out.shape == (1, seq, d_model), out.shape
    assert out.dtype == jnp.float32
    assert jnp.allclose(out, ref, atol=1e-5, rtol=1e-5)

    # Larger table: exercises multi-chunk, multi-step grid and lane-dense path.
    seq2, d2 = 1088, 128
    x2 = jnp.zeros((1, seq2, d2), jnp.float32)
    out2 = jax.block_until_ready(positional_embedding(x2, d2))
    ref2 = _reference(seq2, d2)
    assert out2.shape == (1, seq2, d2)
    # Angle-sum decomposition vs direct fl(p*w) differ by up to ~1 ulp(angle)
    # (~1e-4 at p ~ 1e3 in float32); both are valid roundings of the same table.
    assert jnp.allclose(out2, ref2, atol=2e-4, rtol=1e-5)

    # Realistic d_model with an even multi-step grid (v7x-balanced tiling).
    seq3, d3 = 2048, 512
    x3 = jnp.zeros((1, seq3, d3), jnp.float32)
    out3 = jax.block_until_ready(positional_embedding(x3, d3))
    ref3 = _reference(seq3, d3)
    assert out3.shape == (1, seq3, d3)
    assert jnp.allclose(out3, ref3, atol=5e-4, rtol=1e-5)

    print("KERNEL_OK")
</pallas_src>

<mosaic_0001>
module attributes {stable_mosaic.version = 11 : i64} {
  func.func @_pe_kernel(%arg0: i32, %arg1: memref<1x128xf32, #tpu.memory_space<vmem>>, %arg2: memref<1x128xf32, #tpu.memory_space<vmem>>, %arg3: memref<128x128xf32, #tpu.memory_space<vmem>>, %arg4: memref<128x128xf32, #tpu.memory_space<vmem>>, %arg5: memref<128x128xf32, #tpu.memory_space<vmem>>) attributes {dimension_semantics = [#tpu.dimension_semantics<parallel>], iteration_bounds = array<i64: 1>, scalar_prefetch = 0 : i64, scratch_operands = 0 : i64, tpu.core_type = #tpu.core_type<tc>, window_params = [{pipeline_mode = #tpu.pipeline_mode<synchronous>, transform_indices = @transform_0, window_bounds = array<i64: 1, 128>}, {pipeline_mode = #tpu.pipeline_mode<synchronous>, transform_indices = @transform_1, window_bounds = array<i64: 1, 128>}, {pipeline_mode = #tpu.pipeline_mode<synchronous>, transform_indices = @transform_2, window_bounds = array<i64: 128, 128>}, {pipeline_mode = #tpu.pipeline_mode<synchronous>, transform_indices = @transform_3, window_bounds = array<i64: 128, 128>}, {transform_indices = @transform_4, window_bounds = array<i64: 128, 128>}]} {
    %c0_i32 = arith.constant 0 : i32
    %c1_i32 = arith.constant 1 : i32
    %0 = arith.muli %arg0, %c1_i32 : i32
    %1 = arith.addi %0, %c0_i32 : i32
    %2 = arith.index_cast %1 : i32 to index
    %c0 = arith.constant 0 : index
    %3 = vector.load %arg1[%2, %c0] : memref<1x128xf32, #tpu.memory_space<vmem>>, vector<1x128xf32>
    %4 = arith.index_cast %1 : i32 to index
    %c0_0 = arith.constant 0 : index
    %5 = vector.load %arg2[%4, %c0_0] : memref<1x128xf32, #tpu.memory_space<vmem>>, vector<1x128xf32>
    %c128_i32 = arith.constant 128 : i32
    %6 = arith.muli %c0_i32, %c128_i32 : i32
    %7 = tpu.assume_multiple %6, 128 : i32
    %c0_1 = arith.constant 0 : index
    %c0_2 = arith.constant 0 : index
    %8 = vector.load %arg3[%c0_1, %c0_2] : memref<128x128xf32, #tpu.memory_space<vmem>>, vector<128x128xf32>
    %9 = vector.broadcast %3 : vector<1x128xf32> to vector<128x128xf32>
    %10 = arith.mulf %9, %8 : vector<128x128xf32>
    %c0_3 = arith.constant 0 : index
    %c0_4 = arith.constant 0 : index
    %11 = vector.load %arg4[%c0_3, %c0_4] : memref<128x128xf32, #tpu.memory_space<vmem>>, vector<128x128xf32>
    %12 = vector.broadcast %5 : vector<1x128xf32> to vector<128x128xf32>
    %13 = arith.mulf %12, %11 : vector<128x128xf32>
    %14 = arith.addf %10, %13 : vector<128x128xf32>
    %15 = arith.index_cast %7 : i32 to index
    %c0_5 = arith.constant 0 : index
    %16 = vector.load %arg5[%15, %c0_5] : memref<128x128xf32, #tpu.memory_space<vmem>>, vector<128x128xf32>
    tpu.vector_store %arg5[%15, %c0_5], %14 {strides = array<i32>} : memref<128x128xf32, #tpu.memory_space<vmem>>, vector<128x128xf32>,
    %c1_i32_6 = arith.constant 1 : i32
    return
  }
  func.func @transform_0(%arg0: i32) -> (i32, i32) {
    %c0_i32 = arith.constant 0 : i32
    %c0_i32_0 = arith.constant 0 : i32
    %c0_i32_1 = arith.constant 0 : i32
    return %c0_i32, %c0_i32_0 : i32, i32
  }
  func.func @transform_1(%arg0: i32) -> (i32, i32) {
    %c0_i32 = arith.constant 0 : i32
    %c0_i32_0 = arith.constant 0 : i32
    %c0_i32_1 = arith.constant 0 : i32
    return %c0_i32, %c0_i32_0 : i32, i32
  }
  func.func @transform_2(%arg0: i32) -> (i32, i32) {
    %c0_i32 = arith.constant 0 : i32
    %c0_i32_0 = arith.constant 0 : i32
    %c0_i32_1 = arith.constant 0 : i32
    return %c0_i32, %c0_i32_0 : i32, i32
  }
  func.func @transform_3(%arg0: i32) -> (i32, i32) {
    %c0_i32 = arith.constant 0 : i32
    %c0_i32_0 = arith.constant 0 : i32
    %c0_i32_1 = arith.constant 0 : i32
    return %c0_i32, %c0_i32_0 : i32, i32
  }
  func.func @transform_4(%arg0: i32) -> (i32, i32) {
    %c0_i32 = arith.constant 0 : i32
    %c0_i32_0 = arith.constant 0 : i32
    return %arg0, %c0_i32 : i32, i32
  }
}

</mosaic_0001>

<bundles_post_ra>
// kernel: tpu_custom_call.1
= control target key start
LH: loop header
LB: loop body
LE: loop exit
PB: predicated region body
PF: predicated region fallthrough
CT: control target
= control target key end

     0   :  { %9 = vsyncpa [#allocation3], 0  ;;  %s414_s0 = inlined_call_operand.hbm [shape: f32[1,128], index: 0, kind: input, shape index: {}]   ;;  %s415_s1 = inlined_call_operand.vmem [shape: f32[1,128], index: 1, kind: input, shape index: {}]   ;;  %s416_s2 = inlined_call_operand.hbm [shape: f32[128,128], index: 2, kind: input, shape index: {}]   ;;  %s417_s3 = inlined_call_operand.hbm [shape: f32[128,128], index: 3, kind: input, shape index: {}]   ;;  %s418_s4 = inlined_call_operand.hbm [shape: f32[128,128], index: 4, kind: output, shape index: {}]  }
   0x1   :  { %10 = vsyncpa [#allocation6], 0 }
   0x2   :  { %11 = vsyncpa [#allocation4], 0  ;;  %s287_s15 = smov [#allocation5]   ;;  %s193_s19 = scalar_lea.hbm %s416_s2, 2048 }
   0x3   :  { %s29_s16 = sshll.u32 %s287_s15, 4  ;;  %p194_p0 = scmp.ne.s32.totalorder %s416_s2, %s193_s19  ;;  %s30_s16 = int_to_ptr.vmem [resolvable:$true] %s29_s16 }
   0x4   :  { %p197_p1 = scmp.lt.u32.totalorder %s193_s19, %s416_s2 }
   0x6   :  { %p199_p2 = pnand %p197_p1, %p194_p0 }
   0x8   :  { %202 = shalt.err (!%p199_p2)
}
   0x9   :  { %s203_s24 = scalar_lea.vmem %s30_s16, 2048  ;;  %p208_p4 = scmp.lt.s32.totalorder %s30_s16, %s30_s16 }
   0xa   :  { %p204_p3 = scmp.ne.s32.totalorder %s30_s16, %s203_s24  ;;  %p209_p5 = scmp.lt.s32.totalorder %s203_s24, %s203_s24 }
   0xc   :  { %p210_p6 = por %p209_p5, %p208_p4 }
   0xe   :  { %p211_p7 = pnand %p210_p6, %p204_p3 }
  0x10   :  { %214 = shalt.err (!%p211_p7)
}
  0x11   :  { %s288_s25 = smov 128   ;;  %s289_s26 = smov 8  }
  0x12   :  { %35 = dma.hbm_to_vmem [thread:$0]  %s416_s2, 2048, %s30_s16, [#allocation6], %s288_s25, %s288_s25, %s289_s26  }
  0x13   :  { %s290_s29 = smov [#allocation2]   ;;  %s291_s5 = smov [#allocation7]  }
  0x14   :  { %s18_s30 = sshll.u32 %s290_s29, 4  ;;  %s41_s6 = sshll.u32 %s291_s5, 4  ;;  %s19_s30 = int_to_ptr.vmem [resolvable:$true] %s18_s30  ;;  %s42_s6 = int_to_ptr.vmem [resolvable:$true] %s41_s6 }
  0x15   :  { %s215_s9 = scalar_lea.hbm %s414_s0, 16 }
  0x16   :  { %p216_p8 = scmp.ne.s32.totalorder %s414_s0, %s215_s9  ;;  %p219_p9 = scmp.lt.u32.totalorder %s215_s9, %s414_s0 }
  0x18   :  { %p221_p10 = pnand %p219_p9, %p216_p8 }
  0x1a   :  { %224 = shalt.err (!%p221_p10)
}
  0x1b   :  { %s225_s2 = scalar_lea.vmem %s19_s30, 16  ;;  %s229_s14 = scalar_lea.vmem %s19_s30, 32 }
  0x1c   :  { %p226_p11 = scmp.ne.s32.totalorder %s19_s30, %s225_s2  ;;  %p230_p12 = scmp.lt.s32.totalorder %s19_s30, %s19_s30 }
  0x1d   :  { %p231_p13 = scmp.lt.s32.totalorder %s229_s14, %s225_s2 }
  0x1f   :  { %p232_p0 = por %p231_p13, %p230_p12 }
  0x21   :  { %p233_p1 = pnand %p232_p0, %p226_p11 }
  0x23   :  { %236 = shalt.err (!%p233_p1)
}
  0x24   :  { %21 = dma.hbm_to_vmem [thread:$0]  %s414_s0, 16, %s19_s30, [#allocation3]  }
  0x25   :  { %s237_s19 = scalar_lea.hbm %s417_s3, 2048 }
  0x26   :  { %p238_p2 = scmp.ne.s32.totalorder %s417_s3, %s237_s19  ;;  %p241_p3 = scmp.lt.u32.totalorder %s237_s19, %s417_s3 }
  0x28   :  { %p243_p4 = pnand %p241_p3, %p238_p2 }
  0x2a   :  { %246 = shalt.err (!%p243_p4)
}
  0x2b   :  { %s247_s24 = scalar_lea.vmem %s42_s6, 2048  ;;  %p252_p6 = scmp.lt.s32.totalorder %s42_s6, %s42_s6 }
  0x2c   :  { %p248_p5 = scmp.ne.s32.totalorder %s42_s6, %s247_s24  ;;  %p253_p7 = scmp.lt.s32.totalorder %s247_s24, %s247_s24 }
  0x2e   :  { %p254_p8 = por %p253_p7, %p252_p6 }
  0x30   :  { %p255_p9 = pnand %p254_p8, %p248_p5 }
  0x32   :  { %258 = shalt.err (!%p255_p9)
}
  0x33   :  { %47 = dma.hbm_to_vmem [thread:$0]  %s417_s3, 2048, %s42_s6, [#allocation6], %s288_s25, %s288_s25, %s289_s26  }
  0x34   :  { %281 = dma.done.wait [#allocation3], 16  }
  0x35   :  { %282 = vsyncadd [#allocation3], 4294967280 }
  0x36   :  { %283 = dma.done.wait [#allocation6], 4096  }
  0x37   :  { %284 = vsyncadd [#allocation6], 4294963200  ;;  %v360_v0 = vld [vmem:[#allocation2] ss:$0 sm:$0xff]  ;;  %v59_v2 = vld [vmem:[#allocation5] sm:$0xff] }
  0x38   :  { %v365_v1 = vld [vmem:[%s415_s1] ss:$0 sm:$0xff]  ;;  %v81_v3 = vmul.f32 %v360_v0, %v59_v2  ;;  %v97_v4 = vld [vmem:[#allocation7] sm:$0xff]  ;;  %v60_v5 = vld [vmem:[#allocation5 + $0x8] sm:$0xff]  ;;  %s292_s1 = smov [#allocation8]  }
  0x39   :  { %v98_v6 = vld [vmem:[#allocation7 + $0x8] sm:$0xff]  ;;  %v119_v7 = vmul.f32 %v365_v1, %v97_v4  ;;  %v82_v8 = vmul.f32 %v360_v0, %v60_v5  ;;  %v61_v10 = vld [vmem:[#allocation5 + $0x10] sm:$0xff]  ;;  %v62_v12 = vld [vmem:[#allocation5 + $0x18] sm:$0xff]  ;;  %s172_s3 = sshll.u32 %s292_s1, 4  ;;  %s173_s3 = int_to_ptr.vmem [resolvable:$true] %s172_s3 }
  0x3a   :  { %v120_v9 = vmul.f32 %v365_v1, %v98_v6  ;;  %v99_v11 = vld [vmem:[#allocation7 + $0x10] sm:$0xff]  ;;  %v83_v13 = vmul.f32 %v360_v0, %v61_v10  ;;  %v84_v15 = vmul.f32 %v360_v0, %v62_v12  ;;  %v100_v16 = vld [vmem:[#allocation7 + $0x18] sm:$0xff]  ;;  %v63_v17 = vld [vmem:[#allocation5 + $0x20] sm:$0xff]  ;;  %s259_s30 = scalar_lea.vmem %s173_s3, 2048  ;;  %p264_p11 = scmp.lt.s32.totalorder %s173_s3, %s173_s3 }
  0x3b   :  { %v121_v14 = vmul.f32 %v365_v1, %v99_v11  ;;  %v101_v18 = vld [vmem:[#allocation7 + $0x20] sm:$0xff]  ;;  %v135_v19 = vadd.f32 %v119_v7, %v81_v3  ;;  %v122_v21 = vmul.f32 %v365_v1, %v100_v16  ;;  %v85_v22 = vmul.f32 %v360_v0, %v63_v17  ;;  %v64_v23 = vld [vmem:[#allocation5 + $0x28] sm:$0xff]  ;;  %v65_v25 = vld [vmem:[#allocation5 + $0x30] sm:$0xff]  ;;  %p260_p10 = scmp.ne.s32.totalorder %s173_s3, %s259_s30  ;;  %p265_p12 = scmp.lt.s32.totalorder %s259_s30, %s259_s30 }
  0x3c   :  { %v136_v20 = vadd.f32 %v120_v9, %v82_v8  ;;  %v102_v24 = vld [vmem:[#allocation7 + $0x28] sm:$0xff]  ;;  %v123_v27 = vmul.f32 %v365_v1, %v101_v18  ;;  %v86_v28 = vmul.f32 %v360_v0, %v64_v23  ;;  %v103_v30 = vld [vmem:[#allocation7 + $0x30] sm:$0xff]  ;;  %v66_v31 = vld [vmem:[#allocation5 + $0x38] sm:$0xff]  ;;  %v87_v34 = vmul.f32 %v360_v0, %v65_v25 }
  0x3d   :  { %v137_v26 = vadd.f32 %v121_v14, %v83_v13  ;;  %v124_v29 = vmul.f32 %v365_v1, %v102_v24  ;;  %v104_v32 = vld [vmem:[#allocation7 + $0x38] sm:$0xff]  ;;  %151 = vst [vmem:[#allocation8] sm:$0xff] %v135_v19  ;;  %v138_v33 = vadd.f32 %v122_v21, %v84_v15  ;;  %v125_v35 = vmul.f32 %v365_v1, %v103_v30  ;;  %v67_v37 = vld [vmem:[#allocation5 + $0x40] sm:$0xff]  ;;  %v68_v39 = vld [vmem:[#allocation5 + $0x48] sm:$0xff]  ;;  %p266_p13 = por %p265_p12, %p264_p11 }
  0x3e   :  { %152 = vst [vmem:[#allocation8 + $0x8] sm:$0xff] %v136_v20  ;;  %v88_v36 = vmul.f32 %v360_v0, %v66_v31  ;;  %v105_v38 = vld [vmem:[#allocation7 + $0x40] sm:$0xff]  ;;  %v139_v40 = vadd.f32 %v123_v27, %v85_v22  ;;  %v126_v42 = vmul.f32 %v365_v1, %v104_v32  ;;  %v89_v43 = vmul.f32 %v360_v0, %v67_v37  ;;  %v106_v44 = vld [vmem:[#allocation7 + $0x48] sm:$0xff]  ;;  %v69_v45 = vld [vmem:[#allocation5 + $0x50] sm:$0xff] }
  0x3f   :  { %153 = vst [vmem:[#allocation8 + $0x10] sm:$0xff] %v137_v26  ;;  %v140_v41 = vadd.f32 %v124_v29, %v86_v28  ;;  %v107_v46 = vld [vmem:[#allocation7 + $0x50] sm:$0xff]  ;;  %154 = vst [vmem:[#allocation8 + $0x18] sm:$0xff] %v138_v33  ;;  %v141_v47 = vadd.f32 %v125_v35, %v87_v34  ;;  %v127_v48 = vmul.f32 %v365_v1, %v105_v38  ;;  %v70_v51 = vld [vmem:[#allocation5 + $0x58] sm:$0xff]  ;;  %p267_p0 = pnand %p266_p13, %p260_p10 }
  0x40   :  { %v90_v49 = vmul.f32 %v360_v0, %v68_v39  ;;  %v128_v50 = vmul.f32 %v365_v1, %v106_v44  ;;  %v108_v52 = vld [vmem:[#allocation7 + $0x58] sm:$0xff]  ;;  %v71_v53 = vld [vmem:[#allocation5 + $0x60] sm:$0xff]  ;;  %155 = vst [vmem:[#allocation8 + $0x20] sm:$0xff] %v139_v40  ;;  %v142_v54 = vadd.f32 %v126_v42, %v88_v36  ;;  %v91_v55 = vmul.f32 %v360_v0, %v69_v45  ;;  %v72_v59 = vld [vmem:[#allocation5 + $0x68] sm:$0xff] }
  0x41   :  { %156 = vst [vmem:[#allocation8 + $0x28] sm:$0xff] %v140_v41  ;;  %v129_v56 = vmul.f32 %v365_v1, %v107_v46  ;;  %v92_v57 = vmul.f32 %v360_v0, %v70_v51  ;;  %v109_v58 = vld [vmem:[#allocation7 + $0x60] sm:$0xff]  ;;  %v110_v60 = vld [vmem:[#allocation7 + $0x68] sm:$0xff]  ;;  %157 = vst [vmem:[#allocation8 + $0x30] sm:$0xff] %v141_v47  ;;  %v143_v61 = vadd.f32 %v127_v48, %v89_v43 }
  0x42   :  { %v144_v62 = vadd.f32 %v128_v50, %v90_v49  ;;  %v130_v63 = vmul.f32 %v365_v1, %v108_v52  ;;  %v93_v2 = vmul.f32 %v360_v0, %v71_v53  ;;  %v73_v3 = vld [vmem:[#allocation5 + $0x70] sm:$0xff]  ;;  %v74_v5 = vld [vmem:[#allocation5 + $0x78] sm:$0xff]  ;;  %158 = vst [vmem:[#allocation8 + $0x38] sm:$0xff] %v142_v54  ;;  %v131_v7 = vmul.f32 %v365_v1, %v109_v58 }
  0x43   :  { %v111_v4 = vld [vmem:[#allocation7 + $0x70] sm:$0xff]  ;;  %v145_v6 = vadd.f32 %v129_v56, %v91_v55  ;;  %v94_v8 = vmul.f32 %v360_v0, %v72_v59  ;;  %v132_v9 = vmul.f32 %v365_v1, %v110_v60  ;;  %v112_v10 = vld [vmem:[#allocation7 + $0x78] sm:$0xff]  ;;  %159 = vst [vmem:[#allocation8 + $0x40] sm:$0xff] %v143_v61  ;;  %v95_v12 = vmul.f32 %v360_v0, %v73_v3 }
  0x44   :  { %160 = vst [vmem:[#allocation8 + $0x48] sm:$0xff] %v144_v62  ;;  %v146_v11 = vadd.f32 %v130_v63, %v92_v57  ;;  %v133_v13 = vmul.f32 %v365_v1, %v111_v4  ;;  %v96_v14 = vmul.f32 %v360_v0, %v74_v5  ;;  %v147_v15 = vadd.f32 %v131_v7, %v93_v2 }
  0x45   :  { %161 = vst [vmem:[#allocation8 + $0x50] sm:$0xff] %v145_v6  ;;  %v148_v16 = vadd.f32 %v132_v9, %v94_v8  ;;  %v134_v17 = vmul.f32 %v365_v1, %v112_v10 }
  0x46   :  { %162 = vst [vmem:[#allocation8 + $0x58] sm:$0xff] %v146_v11  ;;  %v149_v18 = vadd.f32 %v133_v13, %v95_v12  ;;  %163 = vst [vmem:[#allocation8 + $0x60] sm:$0xff] %v147_v15 }
  0x47   :  { %164 = vst [vmem:[#allocation8 + $0x68] sm:$0xff] %v148_v16  ;;  %v150_v19 = vadd.f32 %v134_v17, %v96_v14 }
  0x48   :  { %165 = vst [vmem:[#allocation8 + $0x70] sm:$0xff] %v149_v18 }
  0x49   :  { %166 = vst [vmem:[#allocation8 + $0x78] sm:$0xff] %v150_v19 }
  0x4a   :  { %270 = shalt.err (!%p267_p0)
}
  0x4b   :  { %s271_s7 = scalar_lea.hbm %s418_s4, 2048 }
  0x4c   :  { %p272_p1 = scmp.ne.s32.totalorder %s418_s4, %s271_s7  ;;  %p275_p2 = scmp.lt.u32.totalorder %s271_s7, %s418_s4 }
  0x4e   :  { %p277_p3 = pnand %p275_p2, %p272_p1 }
  0x50   :  { %280 = shalt.err (!%p277_p3)
}
  0x51   :  { %178 = dma.vmem_to_hbm [thread:$0]  %s173_s3, 2048, %s418_s4, [#allocation4], %s288_s25, %s288_s25, %s289_s26  }
  0x52   :  { %285 = dma.done.wait [#allocation4], 2048  }
  0x53   :  { %286 = vsyncadd [#allocation4], 4294965248 }
  0x54   :  { %182 = vsyncpa [#allocation3], 1 }
  0x55   :  { %183 = vsyncpa [#allocation6], 1 }
  0x56   :  { %184 = vsyncpa [#allocation4], 1 }

</bundles_post_ra>
